<compile_context>
chip_gen: v7x
topology: tpu7x:2x2x1
jax: 0.10.0
libtpu: 0.0.40
codegen_flags: <defaults>
</compile_context>

<pallas_src>
import math
import functools

import jax
import jax.numpy as jnp
from jax.experimental import pallas as pl
from jax.experimental.pallas import tpu as pltpu


_NEG_F32_MIN = float(jnp.finfo(jnp.float32).min)


def _vmem_capacity_bytes():
    """Best-effort VMEM capacity query; conservative fallback if unavailable."""
    try:
        info = pltpu.get_tpu_info()
        for attr in ("vmem_capacity_bytes", "vmem_size_bytes", "vmem_bytes"):
            v = getattr(info, attr, None)
            if v:
                return int(v)
    except Exception:
        pass
    return 64 * 1024 * 1024  # v7x-sized: safe on every generation


def _pick_tile(dim, target):
    """Largest divisor of `dim` that is <= target (never falls back to the full
    dimension, so blocks always tile the array exactly and never blow up VMEM)."""
    if dim <= target:
        return dim
    t = int(target)
    while t > 1 and dim % t != 0:
        t -= 1
    return max(t, 1)


def _rotate_half_grouped(x, head_dim):
    """rotate_half applied independently to every contiguous `head_dim` segment
    of the last axis (a block may carry several heads side by side)."""
    w = x.shape[-1]
    half = head_dim // 2
    if w % 128 == 0:
        # Lane-rotation path (XLU slot, no relayout).  Per-head rotate_half is a
        # lane select between a +half and a -half full-width roll; the selected
        # lanes never cross a head boundary.
        fwd = pltpu.roll(x, shift=w - half, axis=-1)   # out[i] = x[i + half]
        bwd = pltpu.roll(x, shift=half, axis=-1)       # out[i] = x[i - half]
        lane = jax.lax.broadcasted_iota(jnp.int32, x.shape, x.ndim - 1) % head_dim
        return jnp.where(lane < half, -fwd, bwd)
    # Small / unaligned head dims (tiny test, interpret mode): slice + concat.
    g = w // head_dim
    xr = x.reshape(x.shape[:-1] + (g, head_dim))
    rot = jnp.concatenate([-xr[..., half:], xr[..., :half]], axis=-1)
    return rot.reshape(x.shape)


# ----------------------------------------------------------------------------
# Kernel 1: fused Q/K/V projection (grouped heads per column block) + RoPE.
#   x   : (tm, tk)        activations
#   w   : (tk, WC)        one head-group's weight slice ([q|k|v] groups stacked)
#   cos : (tm, WC)        rotary tables, tiled per head in the group
#   out : (tm, WC)        head-group-major output block
# ----------------------------------------------------------------------------
def qkv_proj_kernel(x_ref, w_ref, cos_ref, sin_ref, out_ref, acc_ref,
                    *, num_rope_cols, head_dim):
    # Program-id reads are hoisted to the top (never inside pl.when branches).
    col = pl.program_id(1)
    k_idx = pl.program_id(2)
    k_last = pl.num_programs(2) - 1

    @pl.when(k_idx == 0)
    def _():
        acc_ref[...] = jnp.zeros(acc_ref.shape, acc_ref.dtype)

    acc_ref[...] += jnp.dot(x_ref[...], w_ref[...],
                            preferred_element_type=jnp.float32)

    @pl.when(k_idx == k_last)
    def _():
        res = acc_ref[...]

        def _write_rope():          # q and k head groups
            cos = cos_ref[...].astype(jnp.float32)
            sin = sin_ref[...].astype(jnp.float32)
            roped = res * cos + _rotate_half_grouped(res, head_dim) * sin
            out_ref[...] = roped.astype(out_ref.dtype)

        def _write_plain():         # v head groups
            out_ref[...] = res.astype(out_ref.dtype)

        pl.when(col < num_rope_cols)(_write_rope)
        pl.when(col >= num_rope_cols)(_write_plain)


# ----------------------------------------------------------------------------
# Kernel 2: flash attention with online softmax.
#   grid = (B, NH, S // tq, S // tkv); kv axis is the reduction ("arbitrary").
#   causal=True  -> mask generated in-kernel, fully-masked kv tiles skipped.
#   has_mask=True-> additive HF mask streamed in (tq, tkv) bf16 tiles.
# ----------------------------------------------------------------------------
def flash_attn_kernel(*args, causal, has_mask):
    if has_mask:
        q_ref, k_ref, v_ref, mask_ref, o_ref, m_sc, l_sc, acc_sc = args
    else:
        q_ref, k_ref, v_ref, o_ref, m_sc, l_sc, acc_sc = args
        mask_ref = None

    qi = pl.program_id(2)
    ki = pl.program_id(3)
    kv_last = pl.num_programs(3) - 1
    tq = q_ref.shape[0]
    tkv = k_ref.shape[0]

    @pl.when(ki == 0)
    def _():
        m_sc[...] = jnp.full(m_sc.shape, -jnp.inf, m_sc.dtype)
        l_sc[...] = jnp.zeros(l_sc.shape, l_sc.dtype)
        acc_sc[...] = jnp.zeros(acc_sc.shape, acc_sc.dtype)

    def _update():
        # q already carries the 1/sqrt(head_dim) scale (folded into W_q).
        s = jax.lax.dot_general(q_ref[...], k_ref[...],
                                (((1,), (1,)), ((), ())),
                                preferred_element_type=jnp.float32)
        if causal:
            rows = qi * tq + jax.lax.broadcasted_iota(jnp.int32, (tq, tkv), 0)
            cols = ki * tkv + jax.lax.broadcasted_iota(jnp.int32, (tq, tkv), 1)
            s = jnp.where(cols <= rows, s, -jnp.inf)
        elif has_mask:
            s = s + mask_ref[...].astype(jnp.float32)
            s = jnp.maximum(s, _NEG_F32_MIN)        # torch-parity clamp

        m_prev = m_sc[...]
        m_new = jnp.maximum(m_prev, jnp.max(s, axis=-1, keepdims=True))
        alpha = jnp.exp(m_prev - m_new)
        p = jnp.exp(s - m_new)                       # (tq, tkv) f32
        l_sc[...] = alpha * l_sc[...] + jnp.sum(p, axis=-1, keepdims=True)
        acc_sc[...] = alpha * acc_sc[...] + jnp.dot(
            p.astype(v_ref.dtype), v_ref[...], preferred_element_type=jnp.float32)
        m_sc[...] = m_new

    if causal:
        # Skip kv tiles that lie entirely above the diagonal (~2x less MXU/EUP
        # work at long S); the causal mask itself costs no HBM traffic.
        pl.when(ki * tkv <= qi * tq + tq - 1)(_update)
    else:
        _update()

    @pl.when(ki == kv_last)
    def _():
        o_ref[...] = (acc_sc[...] / l_sc[...]).astype(o_ref.dtype)


# ----------------------------------------------------------------------------
# Kernel 3: output projection, reducing over head groups (K = CG*head_dim).
# ----------------------------------------------------------------------------
def o_proj_kernel(a_ref, w_ref, o_ref, acc_ref):
    g = pl.program_id(2)
    g_last = pl.num_programs(2) - 1

    @pl.when(g == 0)
    def _():
        acc_ref[...] = jnp.zeros(acc_ref.shape, acc_ref.dtype)

    acc_ref[...] += jnp.dot(a_ref[...], w_ref[...],
                            preferred_element_type=jnp.float32)

    @pl.when(g == g_last)
    def _():
        o_ref[...] = acc_ref[...].astype(o_ref.dtype)


# ----------------------------------------------------------------------------
# Python wrapper mirroring LlamaAttention.forward (prefill path).
# ----------------------------------------------------------------------------
def llama_attention_forward(hidden_states, attention_mask, position_ids, params,
                            num_heads, *, causal=False):
    B, S, H = hidden_states.shape
    NH = num_heads
    D = H // NH
    M = B * S
    dtype = hidden_states.dtype

    # ---- generation-aware budgets -------------------------------------------
    vmem_cap = _vmem_capacity_bytes()
    vmem_budget = (3 * vmem_cap) // 4        # ~96 MiB on v5e/v6e, ~48 MiB on v7x
    big_vmem = vmem_cap >= 96 * 1024 * 1024

    # Heads per projection column group: N = CG*D = 256 fills the 256-wide MXU
    # on v6e/v7x and gives lane-dense output stores.
    CG = 2 if (D % 128 == 0 and NH % 2 == 0) else 1
    NG = NH // CG           # number of head groups
    WC = CG * D             # projection / o_proj group width

    # ---- one-time weight layout prep (cheap vs. activations) ----------------
    scale = 1.0 / math.sqrt(D)
    # Fold softmax scale into W_q (RoPE is linear -> pre/post-RoPE scaling equal).
    w_fused = jnp.concatenate([params["wq_t"] * scale, params["wk_t"],
                               params["wv_t"]], axis=1)           # (H, 3H)
    w_heads = w_fused.reshape(H, 3 * NG, WC).transpose(1, 0, 2)    # (3NG, H, WC)
    wo_heads = params["wo_t"].reshape(NG, WC, H)                   # (NG, WC, H)

    # ---- rotary tables gathered by position_ids (tiny wrapper glue) ---------
    inv_freq = 1.0 / (10000.0 ** (jnp.arange(0, D, 2, dtype=jnp.float32) / D))
    t = jnp.arange(S, dtype=jnp.float32)
    freqs = jnp.einsum("i,j->ij", t, inv_freq)                     # (S, D/2)
    emb = jnp.concatenate([freqs, freqs], axis=-1)                 # (S, D)
    cos2d = jnp.cos(emb).astype(dtype)[position_ids].reshape(M, D)
    sin2d = jnp.sin(emb).astype(dtype)[position_ids].reshape(M, D)
    if CG > 1:
        cos2d = jnp.tile(cos2d, (1, CG))
        sin2d = jnp.tile(sin2d, (1, CG))

    x2d = hidden_states.reshape(M, H)

    # ---- kernel 1: fused Q/K/V projection + RoPE epilogue -------------------
    tm1 = _pick_tile(M, 512 if big_vmem else 256)
    tk1 = _pick_tile(H, 512)
    qkv = pl.pallas_call(
        functools.partial(qkv_proj_kernel, num_rope_cols=2 * NG, head_dim=D),
        grid=(M // tm1, 3 * NG, H // tk1),
        in_specs=[
            pl.BlockSpec((tm1, tk1), lambda i, j, k: (i, k)),
            pl.BlockSpec((None, tk1, WC), lambda i, j, k: (j, k, 0)),
            pl.BlockSpec((tm1, WC), lambda i, j, k: (i, 0)),
            pl.BlockSpec((tm1, WC), lambda i, j, k: (i, 0)),
        ],
        out_specs=pl.BlockSpec((None, tm1, WC), lambda i, j, k: (j, i, 0)),
        out_shape=jax.ShapeDtypeStruct((3 * NG, M, WC), dtype),
        scratch_shapes=[pltpu.VMEM((tm1, WC), jnp.float32)],
        compiler_params=pltpu.CompilerParams(
            dimension_semantics=("parallel", "parallel", "arbitrary"),
            vmem_limit_bytes=vmem_budget),
    )(x2d, w_heads, cos2d, sin2d)

    # ---- kernel 2: flash attention over (B, NH, q-tiles, kv-tiles) ----------
    tq = _pick_tile(S, 256)
    tkv = _pick_tile(S, 512 if big_vmem else 256)
    nq = S // tq
    nkv = S // tkv

    has_mask = (not causal) and (attention_mask is not None)

    q_spec = pl.BlockSpec((None, tq, D),
                          lambda b, h, qi, ki: (h // CG, b * nq + qi, h % CG))
    k_spec = pl.BlockSpec((None, tkv, D),
                          lambda b, h, qi, ki: (NG + h // CG, b * nkv + ki, h % CG))
    v_spec = pl.BlockSpec((None, tkv, D),
                          lambda b, h, qi, ki: (2 * NG + h // CG, b * nkv + ki, h % CG))
    o_spec = pl.BlockSpec((None, tq, D),
                          lambda b, h, qi, ki: (h // CG, b * nq + qi, h % CG))

    in_specs = [q_spec, k_spec, v_spec]
    inputs = [qkv, qkv, qkv]
    if has_mask:
        # Arbitrary additive HF mask: stream in bf16 tiles (half the bytes).
        mask3d = attention_mask.reshape(B, S, S).astype(jnp.bfloat16)
        in_specs.append(pl.BlockSpec((None, tq, tkv),
                                     lambda b, h, qi, ki: (b, qi, ki)))
        inputs.append(mask3d)

    attn = pl.pallas_call(
        functools.partial(flash_attn_kernel, causal=causal, has_mask=has_mask),
        grid=(B, NH, nq, nkv),
        in_specs=in_specs,
        out_specs=o_spec,
        out_shape=jax.ShapeDtypeStruct((NG, M, WC), dtype),
        scratch_shapes=[pltpu.VMEM((tq, 1), jnp.float32),    # m
                        pltpu.VMEM((tq, 1), jnp.float32),    # l
                        pltpu.VMEM((tq, D), jnp.float32)],   # acc
        compiler_params=pltpu.CompilerParams(
            dimension_semantics=("parallel", "parallel", "parallel", "arbitrary"),
            vmem_limit_bytes=vmem_budget),
    )(*inputs)

    # ---- kernel 3: output projection (reduce over head groups, K = WC) ------
    tm3 = _pick_tile(M, 512 if big_vmem else 256)
    tn3 = _pick_tile(H, 256)
    out2d = pl.pallas_call(
        o_proj_kernel,
        grid=(M // tm3, H // tn3, NG),
        in_specs=[
            pl.BlockSpec((None, tm3, WC), lambda i, j, g: (g, i, 0)),
            pl.BlockSpec((None, WC, tn3), lambda i, j, g: (g, 0, j)),
        ],
        out_specs=pl.BlockSpec((tm3, tn3), lambda i, j, g: (i, j)),
        out_shape=jax.ShapeDtypeStruct((M, H), dtype),
        scratch_shapes=[pltpu.VMEM((tm3, tn3), jnp.float32)],
        compiler_params=pltpu.CompilerParams(
            dimension_semantics=("parallel", "parallel", "arbitrary"),
            vmem_limit_bytes=vmem_budget),
    )(attn, wo_heads)

    return out2d.reshape(B, S, H)


# ----------------------------------------------------------------------------
# Pure-JAX reference (mirrors the torch module) used for a sanity check.
# ----------------------------------------------------------------------------
def reference_forward(hidden_states, attention_mask, position_ids, params,
                      num_heads):
    B, S, H = hidden_states.shape
    D = H // num_heads
    q = (hidden_states @ params["wq_t"]).reshape(B, S, num_heads, D).transpose(0, 2, 1, 3)
    k = (hidden_states @ params["wk_t"]).reshape(B, S, num_heads, D).transpose(0, 2, 1, 3)
    v = (hidden_states @ params["wv_t"]).reshape(B, S, num_heads, D).transpose(0, 2, 1, 3)

    inv_freq = 1.0 / (10000.0 ** (jnp.arange(0, D, 2, dtype=jnp.float32) / D))
    t = jnp.arange(S, dtype=jnp.float32)
    emb = jnp.concatenate([jnp.outer(t, inv_freq)] * 2, axis=-1)
    cos = jnp.cos(emb)[position_ids][:, None]                      # (B,1,S,D)
    sin = jnp.sin(emb)[position_ids][:, None]

    def rot_half(x):
        x1, x2 = x[..., : D // 2], x[..., D // 2:]
        return jnp.concatenate([-x2, x1], axis=-1)

    q = q * cos + rot_half(q) * sin
    k = k * cos + rot_half(k) * sin

    scores = jnp.einsum("bhqd,bhkd->bhqk", q, k) / math.sqrt(D)
    scores = scores + attention_mask
    scores = jnp.maximum(scores, jnp.finfo(jnp.float32).min)
    probs = jax.nn.softmax(scores.astype(jnp.float32), axis=-1).astype(q.dtype)
    out = jnp.einsum("bhqk,bhkd->bhqd", probs, v)
    out = out.transpose(0, 2, 1, 3).reshape(B, S, H)
    return out @ params["wo_t"]


if __name__ == "__main__":
    # Small config consistent with LlamaAttention: hidden=32, heads=4, head_dim=8
    B, S, H, NH = 2, 8, 32, 4
    key = jax.random.PRNGKey(0)
    k_x, k_q, k_k, k_v, k_o = jax.random.split(key, 5)

    hidden_states = jax.random.normal(k_x, (B, S, H), dtype=jnp.float32)

    # nn.Linear weights are (out, in); store transposed (in, out) so kernels do x @ W.
    wscale = 1.0 / math.sqrt(H)
    params = {
        "wq_t": jax.random.normal(k_q, (H, H), jnp.float32) * wscale,
        "wk_t": jax.random.normal(k_k, (H, H), jnp.float32) * wscale,
        "wv_t": jax.random.normal(k_v, (H, H), jnp.float32) * wscale,
        "wo_t": jax.random.normal(k_o, (H, H), jnp.float32) * wscale,
    }

    position_ids = jnp.broadcast_to(jnp.arange(S, dtype=jnp.int32), (B, S))

    # Additive causal attention mask of shape (B, 1, S, S), HF-style.
    neg = float(jnp.finfo(jnp.float32).min)
    causal_tri = jnp.tril(jnp.ones((S, S), dtype=bool))
    attention_mask = jnp.where(causal_tri, 0.0, neg).astype(jnp.float32)
    attention_mask = jnp.broadcast_to(attention_mask[None, None], (B, 1, S, S))

    ref = reference_forward(hidden_states, attention_mask, position_ids, params, NH)

    # Fast path: causal structure generated in-kernel (no mask streamed from HBM).
    out_causal = llama_attention_forward(hidden_states, None, position_ids,
                                         params, NH, causal=True)
    out_causal = jax.block_until_ready(out_causal)

    # General path: arbitrary additive HF mask streamed in tiles.
    out_masked = llama_attention_forward(hidden_states, attention_mask,
                                         position_ids, params, NH, causal=False)
    out_masked = jax.block_until_ready(out_masked)

    assert out_causal.shape == (B, S, H)
    assert jnp.allclose(out_causal, ref, atol=2e-3, rtol=2e-3), "causal path mismatch"
    assert jnp.allclose(out_masked, ref, atol=2e-3, rtol=2e-3), "masked path mismatch"

    print("KERNEL_OK")
</pallas_src>

<mosaic_0001>
module attributes {stable_mosaic.version = 11 : i64} {
  func.func @qkv_proj_kernel(%arg0: i32, %arg1: i32, %arg2: i32, %arg3: memref<16x32xf32, #tpu.memory_space<vmem>>, %arg4: memref<1x32x8xf32, #tpu.memory_space<vmem>>, %arg5: memref<16x8xf32, #tpu.memory_space<vmem>>, %arg6: memref<16x8xf32, #tpu.memory_space<vmem>>, %arg7: memref<1x16x8xf32, #tpu.memory_space<vmem>>, %arg8: memref<16x8xf32, #tpu.memory_space<vmem>>) attributes {dimension_semantics = [#tpu.dimension_semantics<parallel>, #tpu.dimension_semantics<parallel>, #tpu.dimension_semantics<arbitrary>], iteration_bounds = array<i64: 1, 12, 1>, scalar_prefetch = 0 : i64, scratch_operands = 1 : i64, tpu.core_type = #tpu.core_type<tc>, window_params = [{transform_indices = @transform_0, window_bounds = array<i64: 16, 32>}, {transform_indices = @transform_1, window_bounds = array<i64: 1, 32, 8>}, {transform_indices = @transform_2, window_bounds = array<i64: 16, 8>}, {transform_indices = @transform_3, window_bounds = array<i64: 16, 8>}, {transform_indices = @transform_4, window_bounds = array<i64: 1, 16, 8>}]} {
    %c0_i32 = arith.constant 0 : i32
    %0 = arith.cmpi eq, %arg2, %c0_i32 : i32
    %1 = arith.extui %0 : i1 to i32
    %c0_i32_0 = arith.constant 0 : i32
    %2 = arith.cmpi ne, %1, %c0_i32_0 : i32
    scf.if %2 {
      %cst_11 = arith.constant 0.000000e+00 : f32
      %13 = vector.broadcast %cst_11 : f32 to vector<16x8xf32>
      %c0_12 = arith.constant 0 : index
      %c0_13 = arith.constant 0 : index
      %14 = vector.load %arg8[%c0_12, %c0_13] : memref<16x8xf32, #tpu.memory_space<vmem>>, vector<16x8xf32>
      tpu.vector_store %arg8[%c0_12, %c0_13], %13 {strides = array<i32>} : memref<16x8xf32, #tpu.memory_space<vmem>>, vector<16x8xf32>,
    } else {
    }
    %c0 = arith.constant 0 : index
    %c0_1 = arith.constant 0 : index
    %3 = vector.load %arg8[%c0, %c0_1] : memref<16x8xf32, #tpu.memory_space<vmem>>, vector<16x8xf32>
    %c0_2 = arith.constant 0 : index
    %c0_3 = arith.constant 0 : index
    %4 = vector.load %arg3[%c0_2, %c0_3] : memref<16x32xf32, #tpu.memory_space<vmem>>, vector<16x32xf32>
    %c0_4 = arith.constant 0 : index
    %c0_5 = arith.constant 0 : index
    %c0_6 = arith.constant 0 : index
    %5 = vector.load %arg4[%c0_4, %c0_5, %c0_6] : memref<1x32x8xf32, #tpu.memory_space<vmem>>, vector<1x32x8xf32>
    %6 = vector.shape_cast %5 : vector<1x32x8xf32> to vector<32x8xf32>
    %cst = arith.constant dense<0.000000e+00> : vector<16x8xf32>
    %7 = tpu.matmul %4, %6, %cst {dimension_numbers = #tpu.dot_dimension_numbers<[1], [0], [0], [1], [0, 0, 1, 1], [], []>} : vector<16x32xf32>, vector<32x8xf32>, vector<16x8xf32> -> vector<16x8xf32>
    %8 = arith.addf %3, %7 : vector<16x8xf32>
    %c0_7 = arith.constant 0 : index
    %c0_8 = arith.constant 0 : index
    %9 = vector.load %arg8[%c0_7, %c0_8] : memref<16x8xf32, #tpu.memory_space<vmem>>, vector<16x8xf32>
    tpu.vector_store %arg8[%c0_7, %c0_8], %8 {strides = array<i32>} : memref<16x8xf32, #tpu.memory_space<vmem>>, vector<16x8xf32>,
    %c0_i32_9 = arith.constant 0 : i32
    %10 = arith.cmpi eq, %arg2, %c0_i32_9 : i32
    %11 = arith.extui %10 : i1 to i32
    %c0_i32_10 = arith.constant 0 : i32
    %12 = arith.cmpi ne, %11, %c0_i32_10 : i32
    scf.if %12 {
      %c0_11 = arith.constant 0 : index
      %c0_12 = arith.constant 0 : index
      %13 = vector.load %arg8[%c0_11, %c0_12] : memref<16x8xf32, #tpu.memory_space<vmem>>, vector<16x8xf32>
      %c8_i32 = arith.constant 8 : i32
      %14 = arith.cmpi slt, %arg1, %c8_i32 : i32
      %15 = arith.extui %14 : i1 to i32
      %c0_i32_13 = arith.constant 0 : i32
      %16 = arith.cmpi ne, %15, %c0_i32_13 : i32
      scf.if %16 {
        %c0_16 = arith.constant 0 : index
        %c0_17 = arith.constant 0 : index
        %20 = vector.load %arg5[%c0_16, %c0_17] : memref<16x8xf32, #tpu.memory_space<vmem>>, vector<16x8xf32>
        %c0_18 = arith.constant 0 : index
        %c0_19 = arith.constant 0 : index
        %21 = vector.load %arg6[%c0_18, %c0_19] : memref<16x8xf32, #tpu.memory_space<vmem>>, vector<16x8xf32>
        %22 = arith.mulf %13, %20 : vector<16x8xf32>
        %23 = vector.shape_cast %13 : vector<16x8xf32> to vector<16x1x8xf32>
        %24 = vector.extract_strided_slice %23 {offsets = [0, 0, 4], sizes = [16, 1, 4], strides = [1, 1, 1]} : vector<16x1x8xf32> to vector<16x1x4xf32>
        %cst_20 = arith.constant 0.000000e+00 : f32
        %25 = vector.broadcast %cst_20 : f32 to vector<16x1x4xf32>
        %26 = arith.subf %25, %24 : vector<16x1x4xf32>
        %27 = vector.extract_strided_slice %23 {offsets = [0, 0, 0], sizes = [16, 1, 4], strides = [1, 1, 1]} : vector<16x1x8xf32> to vector<16x1x4xf32>
        %28 = tpu.concatenate %26, %27 in 2 : vector<16x1x4xf32>, vector<16x1x4xf32> -> vector<16x1x8xf32>
        %29 = vector.shape_cast %28 : vector<16x1x8xf32> to vector<16x8xf32>
        %30 = arith.mulf %29, %21 : vector<16x8xf32>
        %31 = arith.addf %22, %30 : vector<16x8xf32>
        %c0_21 = arith.constant 0 : index
        %c0_22 = arith.constant 0 : index
        %c0_23 = arith.constant 0 : index
        %32 = vector.load %arg7[%c0_21, %c0_22, %c0_23] : memref<1x16x8xf32, #tpu.memory_space<vmem>>, vector<1x16x8xf32>
        %33 = vector.shape_cast %32 : vector<1x16x8xf32> to vector<16x8xf32>
        %34 = vector.shape_cast %31 : vector<16x8xf32> to vector<1x16x8xf32>
        tpu.vector_store %arg7[%c0_21, %c0_22, %c0_23], %34 {strides = array<i32>} : memref<1x16x8xf32, #tpu.memory_space<vmem>>, vector<1x16x8xf32>,
      } else {
      }
      %c8_i32_14 = arith.constant 8 : i32
      %17 = arith.cmpi sge, %arg1, %c8_i32_14 : i32
      %18 = arith.extui %17 : i1 to i32
      %c0_i32_15 = arith.constant 0 : i32
      %19 = arith.cmpi ne, %18, %c0_i32_15 : i32
      scf.if %19 {
        %c0_16 = arith.constant 0 : index
        %c0_17 = arith.constant 0 : index
        %c0_18 = arith.constant 0 : index
        %20 = vector.load %arg7[%c0_16, %c0_17, %c0_18] : memref<1x16x8xf32, #tpu.memory_space<vmem>>, vector<1x16x8xf32>
        %21 = vector.shape_cast %20 : vector<1x16x8xf32> to vector<16x8xf32>
        %22 = vector.shape_cast %13 : vector<16x8xf32> to vector<1x16x8xf32>
        tpu.vector_store %arg7[%c0_16, %c0_17, %c0_18], %22 {strides = array<i32>} : memref<1x16x8xf32, #tpu.memory_space<vmem>>, vector<1x16x8xf32>,
      } else {
      }
    } else {
    }
    return
  }
  func.func @transform_0(%arg0: i32, %arg1: i32, %arg2: i32) -> (i32, i32) {
    %c0_i32 = arith.constant 0 : i32
    return %arg0, %arg2 : i32, i32
  }
  func.func @transform_1(%arg0: i32, %arg1: i32, %arg2: i32) -> (i32, i32, i32) {
    %c0_i32 = arith.constant 0 : i32
    %c0_i32_0 = arith.constant 0 : i32
    return %arg1, %arg2, %c0_i32 : i32, i32, i32
  }
  func.func @transform_2(%arg0: i32, %arg1: i32, %arg2: i32) -> (i32, i32) {
    %c0_i32 = arith.constant 0 : i32
    %c0_i32_0 = arith.constant 0 : i32
    return %arg0, %c0_i32 : i32, i32
  }
  func.func @transform_3(%arg0: i32, %arg1: i32, %arg2: i32) -> (i32, i32) {
    %c0_i32 = arith.constant 0 : i32
    %c0_i32_0 = arith.constant 0 : i32
    return %arg0, %c0_i32 : i32, i32
  }
  func.func @transform_4(%arg0: i32, %arg1: i32, %arg2: i32) -> (i32, i32, i32) {
    %c0_i32 = arith.constant 0 : i32
    %c0_i32_0 = arith.constant 0 : i32
    return %arg1, %arg0, %c0_i32 : i32, i32, i32
  }
}

</mosaic_0001>

<bundles_post_ra>
// kernel: tpu_custom_call.1
= control target key start
LH: loop header
LB: loop body
LE: loop exit
PB: predicated region body
PF: predicated region fallthrough
CT: control target
= control target key end

     0   :  { %s1202_s15 = smov 0   ;;  %s1204_s16 = smov 0   ;;  %s1419_s0 = inlined_call_operand.vmem [shape: f32[16,32], index: 0, kind: input, shape index: {}]   ;;  %s1420_s1 = inlined_call_operand.vmem [shape: f32[12,32,8], index: 1, kind: input, shape index: {}]   ;;  %s1421_s2 = inlined_call_operand.vmem [shape: f32[16,8], index: 2, kind: input, shape index: {}]   ;;  %s1422_s3 = inlined_call_operand.vmem [shape: f32[16,8], index: 3, kind: input, shape index: {}]   ;;  %s1423_s4 = inlined_call_operand.vmem [shape: f32[12,16,8], index: 4, kind: output, shape index: {}]  }
   0x1   :  { %s1206_s17 = smov 0  }
   0x2 LB: > { %s29_s18 = sadd.s32 1, %s1167_s16  ;;  %p1083_p0 = scmp.ge.s32.totalorder %s1171_s17, 1  ;;  %s1171_s17 = sphi %s1206_s17, %s14_s17   ;;  %s1167_s16 = sphi %s1204_s16, %s1425_s16   ;;  %s1163_s15 = sphi %s1202_s15, %s1424_s15  }
   0x3   : > { %p31_p1 = scmp.ge.s32.totalorder %s29_s18, 12  ;;  %p228_p2 = scmp.lt.s32.totalorder %s1171_s17, 13 }
   0x5   : > { %s1427_s18 = smov (%p31_p1, %s29_s18), 0  ;;  %p229_p3 = pnand %p1083_p0, %p228_p2 }
   0x6   : > { %p290_p4 = scmp.lt.s32.totalorder (!%p229_p3), %s1163_s15, 11  ;;  %v330_v0 = vld [vmem:[%s1419_s0] sm:$0xff] (!%p229_p3)  ;;  %vm336_vm0 = vcmask (!%p229_p3), 261120   ;;  %vm325_vm1 = vcmask (!%p229_p3), 64512   ;;  %v1173_v1 = vmov (!%p229_p3), 0.0   ;;  %v331_v8 = vld [vmem:[%s1419_s0 + $0x8] sm:$0xff] (!%p229_p3) }
   0x7   : > { %232 = sbr.rel (%p229_p3) target bundleno = 453 (0x1c5), region = 36  ;;  %1110 = vmatprep.mubr.msk.f32.mxu0 (!%p229_p3), %vm336_vm0, %v330_v0  ;;  %327 = vst.msk [vmem:[#allocation2 + $0x8] sm:$0xff] (!%p229_p3), %vm325_vm1, %v1173_v1  ;;  %326 = vst.msk [vmem:[#allocation2] sm:$0xff] (!%p229_p3), %vm325_vm1, %v1173_v1  ;;  %p1090_p5 = scmp.ge.s32.totalorder (!%p229_p3), %s1163_s15, 8 }
   0xe   : > { %s291_s21 = scalar_select %p290_p4, %s1163_s15, 11  ;;  %v329_v9 = vld [vmem:[#allocation2 + $0x8] sm:$0xff]  ;;  %v328_v10 = vld [vmem:[#allocation2] sm:$0xff] }
   0xf   : > { %v444_v17 = vlaneseq (!%p1090_p5)  ;;  %v1174_v18 = vmov (!%p1090_p5), 1966171168   ;;  %s1175_s6 = smov (!%p1090_p5), 4   ;;  %s1176_s7 = smov (!%p1090_p5), 124   ;;  %vm810_vm2 = vcmask (!%p1090_p5), 31744   ;;  %vm892_vm3 = vcmask (!%p1090_p5), 1041409  }
  0x10   : > { %s1094_s22 = sshll.u32 %s291_s21, 5  ;;  %s1095_s23 = sshll.u32 %s291_s21, 4  ;;  %v442_v19 = vunpack.c.l.s4 (!%p1090_p5), %v1174_v18  ;;  %vm895_vm4 = vcmask (!%p1090_p5), 1042434   ;;  %vm898_vm5 = vcmask (!%p1090_p5), 1043459   ;;  %vm901_vm6 = vcmask (!%p1090_p5), 1044484  }
  0x11   : > { %s297_s26 = scalar_lea.vmem %s1420_s1, %s1094_s22  ;;  %s1236_s29 = scalar_lea.vmem %s1423_s4, %s1095_s23  ;;  %v445_v20 = vshrl.u32 (!%p1090_p5), %v444_v17, 7  ;;  %vm904_vm7 = vcmask (!%p1090_p5), 1045509   ;;  %vm907_vm8 = vcmask (!%p1090_p5), 1046534   ;;  %vm910_vm9 = vcmask (!%p1090_p5), 1047559  }
  0x12   : > { %v332_v2 = vld [vmem:[%s297_s26] sm:$0xff]  ;;  %v333_v3 = vld [vmem:[%s297_s26 + $0x8] sm:$0xff]  ;;  %v334_v4 = vld [vmem:[%s297_s26 + $0x10] sm:$0xff]  ;;  %v443_v21 = vunpack.c.0.s8 (!%p1090_p5), %v442_v19 }
  0x13   : > { %v1113_v5 = vpack.c.bf16 %v333_v3, %v332_v2  ;;  %v335_v6 = vld [vmem:[%s297_s26 + $0x18] sm:$0xff]  ;;  %v1256_v26 = vsub.s32 (!%p1090_p5), 0, %v445_v20 }
  0x14   : > { %v1117_v7 = vpack.c.bf16 %v335_v6, %v334_v4  ;;  %v1249_v22 = vsub.s32 (!%p1090_p5), %v443_v21, %v445_v20 }
  0x15   : > { %1114 = vmatprep.subr.bf16.mxu0 %v1113_v5 }
  0x16   : > { %1116 = vmatpush3.bf16.msra.mxu0 %v1113_v5 }
  0x17   : > { %1118 = vmatprep.subr.bf16.mxu0 %v1117_v7 }
  0x1a   : > { %1120 = vmatpush3.bf16.msra.mxu0 %v1117_v7 }
  0x1d   : > { %1111 = vmatmul.mubr.msk.f32.vlgmr.msra.gmra.mrb[0].mxu0 %vm336_vm0, %v331_v8 }
  0xf0   : > { %v1112_v11 = vpop.f32.mrb[0].mxu0 }
  0xf1   : > { %v419_v12 = vadd.f32 %v1112_v11, %v329_v9  ;;  %v409_v13 = vpop.f32.mrb[1].mxu0 }
  0xf2   : > { %v418_v14 = vadd.f32 %v409_v13, %v328_v10 }
  0xf3   : > { %422 = vst.msk [vmem:[#allocation2 + $0x8] sm:$0xff] %vm325_vm1, %v419_v12 }
  0xf4   : > { %421 = vst.msk [vmem:[#allocation2] sm:$0xff] %vm325_vm1, %v418_v14 }
  0xf5   : > { %431 = sbr.rel (%p1090_p5) target bundleno = 444 (0x1bc), region = 48 }
  0xfa   : > { %v1244_v15 = vld [vmem:[#allocation2 + $0x8] sm:$0xff] }
  0xfb   : > { %v1246_v16 = vld [vmem:[#allocation2] sm:$0xff]  ;;  %v496_v24 = vrot.slane (!%p1090_p5), %v1244_v15, %v1249_v22  ;;  %v489_v50 = vcombine.high (!%p1090_p5), %v1244_v15, %v1244_v15 }
  0xfc   : > { %v447_v23 = vrot.slane %v1246_v16, %v1249_v22  ;;  %v440_v51 = vcombine.high %v1246_v16, %v1246_v16 }
  0xfd   : > { %v504_v28 = vcombine.high %v496_v24, %v496_v24  ;;  %v512_v29 = vrot.slane %v496_v24, %v1249_v22  ;;  %v503_v56 = vrot.slane %v489_v50, %v1249_v22 }
  0xfe   : > { %v463_v25 = vrot.slane %v447_v23, %v1249_v22  ;;  %v455_v27 = vcombine.high %v447_v23, %v447_v23  ;;  %v454_v59 = vrot.slane %v440_v51, %v1249_v22 }
  0xff   : > { %v526_v33 = vrot.slane %v504_v28, %v1249_v22  ;;  %v534_v36 = vcombine.high %v512_v29, %v512_v29  ;;  %v562_v54 = vsub.f32 0.0, %v512_v29  ;;  %v519_v60 = vrot.slane %v503_v56, %v1249_v22 }
 0x100   : > { %v485_v30 = vcombine.high %v463_v25, %v463_v25  ;;  %v477_v31 = vrot.slane %v455_v27, %v1249_v22  ;;  %v554_v32 = vsub.f32 0.0, %v463_v25  ;;  %v701_v61 = vrot.slane %v463_v25, %v1256_v26 }
 0x101   : > { %v737_v38 = vrot.slane %v526_v33, %v1256_v26  ;;  %v741_v40 = vrot.slane %v534_v36, %v1256_v26  ;;  %v564_v42 = vsub.f32 0.0, %v534_v36  ;;  %v563_v43 = vsub.f32 0.0, %v526_v33 }
 0x102   : > { %v709_v34 = vrot.slane %v485_v30, %v1256_v26  ;;  %v705_v35 = vrot.slane %v477_v31, %v1256_v26  ;;  %v589_v37 = vrot.slane %v554_v32, %v1256_v26  ;;  %v555_v39 = vsub.f32 0.0, %v477_v31 }
 0x103   : > { %v487_v44 = vcombine.high %v477_v31, %v477_v31  ;;  %v556_v45 = vsub.f32 0.0, %v485_v30  ;;  %v629_v46 = vrot.slane %v564_v42, %v1256_v26  ;;  %v625_v47 = vrot.slane %v563_v43, %v1256_v26 }
 0x104   : > { %766 = vrot.lane.b32.xlu0 %v709_v34, %s1175_s6  ;;  %764 = vrot.lane.b32.xlu1 %v705_v35, %s1175_s6  ;;  %v593_v41 = vrot.slane %v555_v39, %v1256_v26  ;;  %v536_v49 = vcombine.high %v526_v33, %v526_v33  ;;  %v621_v57 = vrot.slane %v562_v54, %v1256_v26  ;;  %v566_v0 = vsub.f32 0.0, %v519_v60 }
 0x105   : > { %v557_v48 = vsub.f32 0.0, %v487_v44  ;;  %v597_v52 = vrot.slane %v556_v45, %v1256_v26  ;;  %v713_v62 = vrot.slane %v487_v44, %v1256_v26  ;;  %v470_v63 = vrot.slane %v454_v59, %v1249_v22 }
 0x106   : > { %v565_v55 = vsub.f32 0.0, %v536_v49  ;;  %v505_v1 = vcombine.high %v503_v56, %v503_v56  ;;  %v733_v2 = vrot.slane %v512_v29, %v1256_v26  ;;  %v745_v3 = vrot.slane %v536_v49, %v1256_v26  ;;  %v1338_v56 = vld [vmem:[%s1422_s3] sm:$0xff] }
 0x107   : > { %v601_v53 = vrot.slane %v557_v48, %v1256_v26  ;;  %v558_v4 = vsub.f32 0.0, %v470_v63  ;;  %v456_v5 = vcombine.high %v454_v59, %v454_v59  ;;  %v637_v6 = vrot.slane %v566_v0, %v1256_v26  ;;  %v1343_v59 = vld [vmem:[%s1422_s3 + $0x8] sm:$0xff] }
 0x108   : > { %650 = vrot.lane.b32.xlu0 %v589_v37, %s1176_s7  ;;  %780 = vrot.lane.b32.xlu1 %v737_v38, %s1175_s6  ;;  %v633_v58 = vrot.slane %v565_v55, %v1256_v26  ;;  %v533_v8 = vrot.slane %v505_v1, %v1249_v22  ;;  %v749_v10 = vrot.slane %v519_v60, %v1256_v26  ;;  %v836_v0 = vrot.slane %v1343_v59, 1 }
 0x109   : > { %v605_v7 = vrot.slane %v558_v4, %v1256_v26  ;;  %v484_v9 = vrot.slane %v456_v5, %v1249_v22  ;;  %v717_v11 = vrot.slane %v470_v63, %v1256_v26  ;;  %v535_v14 = vcombine.high %v519_v60, %v519_v60 }
 0x10a   : > { %v567_v12 = vsub.f32 0.0, %v533_v8  ;;  %v486_v19 = vcombine.high %v470_v63, %v470_v63  ;;  %v753_v20 = vrot.slane %v533_v8, %v1256_v26  ;;  %v537_v24 = vcombine.high %v533_v8, %v533_v8 }
 0x10b   : > { %v559_v13 = vsub.f32 0.0, %v484_v9  ;;  %v721_v21 = vrot.slane %v484_v9, %v1256_v26  ;;  %v568_v22 = vsub.f32 0.0, %v535_v14  ;;  %v488_v28 = vcombine.high %v484_v9, %v484_v9 }
 0x10c   : > { %782 = vrot.lane.b32.xlu1 %v741_v40, %s1175_s6  ;;  %652 = vrot.lane.b32.xlu0 %v593_v41, %s1176_s7  ;;  %v641_v17 = vrot.slane %v567_v12, %v1256_v26  ;;  %v560_v23 = vsub.f32 0.0, %v486_v19  ;;  %v757_v29 = vrot.slane %v535_v14, %v1256_v26  ;;  %v725_v30 = vrot.slane %v486_v19, %v1256_v26 }
 0x10d   : > { %v609_v18 = vrot.slane %v559_v13, %v1256_v26  ;;  %v645_v25 = vrot.slane %v568_v22, %v1256_v26  ;;  %v569_v31 = vsub.f32 0.0, %v537_v24  ;;  %v561_v32 = vsub.f32 0.0, %v488_v28 }
 0x10e   : > { %v613_v27 = vrot.slane %v560_v23, %v1256_v26  ;;  %v761_v35 = vrot.slane %v537_v24, %v1256_v26  ;;  %v729_v36 = vrot.slane %v488_v28, %v1256_v26  ;;  %v829_v60 = vrot.slane %v1338_v56, 1 }
 0x10f   : > { %v649_v33 = vrot.slane %v569_v31, %v1256_v26  ;;  %v617_v34 = vrot.slane %v561_v32, %v1256_v26  ;;  %v837_v1 = vrot.slane %v1343_v59, 2  ;;  %v830_v4 = vrot.slane %v1338_v56, 2 }
 0x110   : > { %670 = vrot.lane.b32.xlu1 %v629_v46, %s1176_s7  ;;  %668 = vrot.lane.b32.xlu0 %v625_v47, %s1176_s7  ;;  %v831_v5 = vrot.slane %v1338_v56, 3  ;;  %v839_v8 = vrot.slane %v1343_v59, 4  ;;  %v832_v9 = vrot.slane %v1338_v56, 4  ;;  %v833_v19 = vrot.slane %v1338_v56, 5 }
 0x114   : > { %654 = vrot.lane.b32.xlu0 %v597_v52, %s1176_s7  ;;  %656 = vrot.lane.b32.xlu1 %v601_v53, %s1176_s7 }
 0x118   : > { %666 = vrot.lane.b32.xlu0 %v621_v57, %s1176_s7  ;;  %672 = vrot.lane.b32.xlu1 %v633_v58, %s1176_s7 }
 0x11c   : > { %762 = vrot.lane.b32.xlu0 %v701_v61, %s1175_s6  ;;  %768 = vrot.lane.b32.xlu1 %v713_v62, %s1175_s6 }
 0x120   : > { %778 = vrot.lane.b32.xlu0 %v733_v2, %s1175_s6  ;;  %784 = vrot.lane.b32.xlu1 %v745_v3, %s1175_s6 }
 0x124   : > { %674 = vrot.lane.b32.xlu1 %v637_v6, %s1176_s7  ;;  %658 = vrot.lane.b32.xlu0 %v605_v7, %s1176_s7  ;;  %v838_v7 = vrot.slane %v1343_v59, 3 }
 0x128   : > { %786 = vrot.lane.b32.xlu1 %v749_v10, %s1175_s6  ;;  %770 = vrot.lane.b32.xlu0 %v717_v11, %s1175_s6 }
 0x12c   : > { %676 = vrot.lane.b32.xlu1 %v641_v17, %s1176_s7  ;;  %660 = vrot.lane.b32.xlu0 %v609_v18, %s1176_s7  ;;  %v840_v17 = vrot.slane %v1343_v59, 5 }
 0x130   : > { %788 = vrot.lane.b32.xlu1 %v753_v20, %s1175_s6  ;;  %772 = vrot.lane.b32.xlu0 %v721_v21, %s1175_s6  ;;  %v841_v20 = vrot.slane %v1343_v59, 6  ;;  %v834_v21 = vrot.slane %v1338_v56, 6 }
 0x134   : > { %678 = vrot.lane.b32.xlu1 %v645_v25, %s1176_s7  ;;  %662 = vrot.lane.b32.xlu0 %v613_v27, %s1176_s7 }
 0x138   : > { %790 = vrot.lane.b32.xlu1 %v757_v29, %s1175_s6  ;;  %774 = vrot.lane.b32.xlu0 %v725_v30, %s1175_s6 }
 0x13c   : > { %680 = vrot.lane.b32.xlu1 %v649_v33, %s1176_s7  ;;  %664 = vrot.lane.b32.xlu0 %v617_v34, %s1176_s7 }
 0x140   : > { %792 = vrot.lane.b32.xlu1 %v761_v35, %s1175_s6  ;;  %776 = vrot.lane.b32.xlu0 %v729_v36, %s1175_s6 }
 0x176   : > { %v767_v37 = vpop.permute.xlu0 %766  ;;  %v765_v38 = vpop.permute.xlu1 %764 }
 0x17a   : > { %v651_v39 = vpop.permute.xlu0 %650  ;;  %v781_v40 = vpop.permute.xlu1 %780 }
 0x17e   : > { %v783_v41 = vpop.permute.xlu1 %782  ;;  %v653_v42 = vpop.permute.xlu0 %652 }
 0x17f   : > { %v812_v61 = vsel %vm810_vm2, %v653_v42, %v765_v38 }
 0x180   : > { %v860_v3 = vmul.f32 %v829_v60, %v812_v61 }
 0x182   : > { %v671_v43 = vpop.permute.xlu1 %670  ;;  %v669_v44 = vpop.permute.xlu0 %668  ;;  %v891_v22 = vrot.slane %v860_v3, 7 }
 0x183   : > { %v820_v2 = vsel %vm810_vm2, %v669_v44, %v781_v40  ;;  %v821_v6 = vsel %vm810_vm2, %v671_v43, %v783_v41 }
 0x184   : > { %v868_v12 = vmul.f32 %v836_v0, %v820_v2  ;;  %v869_v23 = vmul.f32 %v837_v1, %v821_v6  ;;  %v433_v1 = vld [vmem:[%s1421_s2 + $0x8] sm:$0xff] }
 0x186   : > { %v655_v45 = vpop.permute.xlu0 %654  ;;  %v657_v46 = vpop.permute.xlu1 %656  ;;  %v912_v33 = vrot.slane %v868_v12, 7  ;;  %v437_v12 = vmul.f32 %v433_v1, %v1244_v15 }
 0x187   : > { %v813_v18 = vsel %vm810_vm2, %v655_v45, %v767_v37 }
 0x188   : > { %v861_v34 = vmul.f32 %v830_v4, %v813_v18 }
 0x18a   : > { %v667_v47 = vpop.permute.xlu0 %666  ;;  %v673_v48 = vpop.permute.xlu1 %672 }
 0x18e   : > { %v763_v49 = vpop.permute.xlu0 %762  ;;  %v769_v50 = vpop.permute.xlu1 %768 }
 0x18f   : > { %v811_v13 = vsel %vm810_vm2, %v651_v39, %v763_v49  ;;  %v814_v24 = vsel %vm810_vm2, %v657_v46, %v769_v50  ;;  %v914_v49 = vrot.slane %v869_v23, 6  ;;  %v894_v50 = vrot.slane %v861_v34, 6 }
 0x190   : > { %v859_v27 = vmul.f32 %v811_v13, %v1338_v56  ;;  %v862_v37 = vmul.f32 %v831_v5, %v814_v24 }
 0x192   : > { %v779_v51 = vpop.permute.xlu0 %778  ;;  %v785_v26 = vpop.permute.xlu1 %784  ;;  %v893_v43 = vsel %vm892_vm3, %v891_v22, %v859_v27 }
 0x193   : > { %v819_v14 = vsel %vm810_vm2, %v667_v47, %v779_v51  ;;  %v822_v25 = vsel %vm810_vm2, %v673_v48, %v785_v26 }
 0x194   : > { %v867_v28 = vmul.f32 %v819_v14, %v1343_v59  ;;  %v870_v38 = vmul.f32 %v838_v7, %v822_v25 }
 0x196   : > { %v675_v52 = vpop.permute.xlu1 %674  ;;  %v659_v53 = vpop.permute.xlu0 %658  ;;  %v913_v44 = vsel %vm892_vm3, %v912_v33, %v867_v28 }
 0x19a   : > { %v787_v54 = vpop.permute.xlu1 %786  ;;  %v771_v55 = vpop.permute.xlu0 %770 }
 0x19b   : > { %v823_v29 = vsel %vm810_vm2, %v675_v52, %v787_v54  ;;  %v815_v30 = vsel %vm810_vm2, %v659_v53, %v771_v55  ;;  %v897_v52 = vrot.slane %v862_v37, 5  ;;  %v916_v53 = vrot.slane %v870_v38, 5 }
 0x19c   : > { %v871_v41 = vmul.f32 %v839_v8, %v823_v29  ;;  %v863_v42 = vmul.f32 %v832_v9, %v815_v30  ;;  %v842_v54 = vrot.slane %v1343_v59, 7  ;;  %v835_v55 = vrot.slane %v1338_v56, 7  ;;  %v432_v56 = vld [vmem:[%s1421_s2] sm:$0xff] }
 0x19d   : > { %v436_v13 = vmul.f32 %v432_v56, %v1246_v16 }
 0x19e   : > { %v677_v57 = vpop.permute.xlu1 %676  ;;  %v661_v58 = vpop.permute.xlu0 %660  ;;  %v918_v60 = vrot.slane %v871_v41, 4  ;;  %v900_v61 = vrot.slane %v863_v42, 4 }
 0x1a2   : > { %v789_v62 = vpop.permute.xlu1 %788  ;;  %v773_v63 = vpop.permute.xlu0 %772 }
 0x1a3   : > { %v824_v35 = vsel %vm810_vm2, %v677_v57, %v789_v62  ;;  %v816_v36 = vsel %vm810_vm2, %v661_v58, %v773_v63  ;;  %v896_v57 = vsel %vm895_vm4, %v894_v50, %v893_v43  ;;  %v915_v58 = vsel %vm895_vm4, %v914_v49, %v913_v44 }
 0x1a4   : > { %v872_v45 = vmul.f32 %v840_v17, %v824_v35  ;;  %v864_v46 = vmul.f32 %v833_v19, %v816_v36  ;;  %v899_v6 = vsel %vm898_vm5, %v897_v52, %v896_v57  ;;  %v917_v7 = vsel %vm898_vm5, %v916_v53, %v915_v58 }
 0x1a6   : > { %v679_v10 = vpop.permute.xlu1 %678  ;;  %v663_v11 = vpop.permute.xlu0 %662  ;;  %v920_v62 = vrot.slane %v872_v45, 3  ;;  %v903_v63 = vrot.slane %v864_v46, 3 }
 0x1aa   : > { %v791_v31 = vpop.permute.xlu1 %790  ;;  %v775_v32 = vpop.permute.xlu0 %774 }
 0x1ab   : > { %v825_v39 = vsel %vm810_vm2, %v679_v10, %v791_v31  ;;  %v817_v40 = vsel %vm810_vm2, %v663_v11, %v775_v32  ;;  %v919_v10 = vsel %vm901_vm6, %v918_v60, %v917_v7  ;;  %v902_v11 = vsel %vm901_vm6, %v900_v61, %v899_v6 }
 0x1ac   : > { %v873_v51 = vmul.f32 %v841_v20, %v825_v39  ;;  %v865_v26 = vmul.f32 %v834_v21, %v817_v40  ;;  %v921_v14 = vsel %vm904_vm7, %v920_v62, %v919_v10  ;;  %v905_v17 = vsel %vm904_vm7, %v903_v63, %v902_v11 }
 0x1ae   : > { %v681_v47 = vpop.permute.xlu1 %680  ;;  %v665_v48 = vpop.permute.xlu0 %664  ;;  %v922_v59 = vrot.slane %v873_v51, 2  ;;  %v906_v3 = vrot.slane %v865_v26, 2 }
 0x1b0   : > { %v923_v20 = vsel %vm907_vm8, %v922_v59, %v921_v14  ;;  %v908_v21 = vsel %vm907_vm8, %v906_v3, %v905_v17 }
 0x1b2   : > { %v793_v0 = vpop.permute.xlu1 %792  ;;  %v777_v2 = vpop.permute.xlu0 %776 }
 0x1b3   : > { %v826_v4 = vsel %vm810_vm2, %v681_v47, %v793_v0  ;;  %v818_v5 = vsel %vm810_vm2, %v665_v48, %v777_v2 }
 0x1b4   : > { %v874_v8 = vmul.f32 %v842_v54, %v826_v4  ;;  %v866_v9 = vmul.f32 %v835_v55, %v818_v5 }
 0x1b6   : > { %v924_v18 = vrot.slane %v874_v8, 1  ;;  %v909_v19 = vrot.slane %v866_v9, 1 }
 0x1b8   : > { %v925_v22 = vsel %vm910_vm9, %v924_v18, %v923_v20  ;;  %v911_v23 = vsel %vm910_vm9, %v909_v19, %v908_v21 }
 0x1b9   : > { %v929_v24 = vadd.f32 %v925_v22, %v437_v12  ;;  %v928_v25 = vadd.f32 %v911_v23, %v436_v13 }
 0x1bb   : > { %931 = vst.msk [vmem:[%s1236_s29 + $0x8] sm:$0xff] %vm325_vm1, %v929_v24  ;;  %930 = vst.msk [vmem:[%s1236_s29] sm:$0xff] %vm325_vm1, %v928_v25 }
 0x1bc PF: > { %p1091_p6 = scmp.lt.s32.totalorder %s1163_s15, 8 }
 0x1bd   : > { %936 = vst.msk [vmem:[%s1236_s29] sm:$0xff] (!%p1091_p6), %vm325_vm1, %v1246_v16  ;;  %937 = vst.msk [vmem:[%s1236_s29 + $0x8] sm:$0xff] (!%p1091_p6), %vm325_vm1, %v1244_v15 }
 0x1be   : > { %935 = sbr.rel (%p1091_p6) target bundleno = 453 (0x1c5), region = 52 }
 0x1c5 PF: > { %s14_s17 = sadd.s32 1, %s1171_s17   ;;  %s1424_s15 = smov %s1167_s16 }
 0x1c6   : > { %p11_p7 = scmp.ge.s32.totalorder %s14_s17, 14   ;;  %s1425_s16 = smov %s1427_s18 }
 0x1c8   :  { %13 = sbr.rel (!%p11_p7) target bundleno = 2 (0x2), region = 91 }

</bundles_post_ra>
